<compile_context>
chip_gen: v7x
topology: tpu7x:2x2x1
jax: 0.10.0
libtpu: 0.0.40
codegen_flags: <defaults>
</compile_context>

<pallas_src>
import jax
import jax.numpy as jnp
from jax.experimental import pallas as pl
from jax.experimental.pallas import tpu as pltpu


def _round_up(n, m):
    return ((n + m - 1) // m) * m


def _mlp_softmax_kernel(x_ref, w1_ref, b1_ref, w2_ref, b2_ref, o_ref):
    # x:  [TM, F]  bf16     w1: [F, 32]   bf16     b1: [1, 32]  f32
    # w2: [32, Cp] bf16     b2: [1, Cp]   f32      o:  [TM, Cp] f32
    # layer_1: Linear + ReLU (dropout = identity in eval), f32 accumulation on MXU
    h = jnp.dot(x_ref[...], w1_ref[...], preferred_element_type=jnp.float32) + b1_ref[...]
    h = jnp.maximum(h, 0.0)

    # layer_out: Linear(32, Cp); feed bf16 activations to the MXU, accumulate in f32
    logits = jnp.dot(h.astype(w2_ref.dtype), w2_ref[...],
                     preferred_element_type=jnp.float32) + b2_ref[...]

    # softmax over the (padded) class axis in f32; padded cols have bias -1e30 -> exp()==0
    m = jnp.max(logits, axis=-1, keepdims=True)
    e = jnp.exp(logits - m)
    denom = jnp.sum(e, axis=-1, keepdims=True)
    o_ref[...] = (e * pl.reciprocal(denom, approx=False)).astype(o_ref.dtype)


def pytorch_multiclass_forward(x, w1, b1, w2, b2, *, tm=1024):
    """x: [B, F] float32; w1:[F,32], b1:[1,32], w2:[32,104], b2:[1,104].
    Returns softmax probabilities [B, 104] in float32."""
    B, F = x.shape
    hidden = w1.shape[1]
    n_classes = w2.shape[1]
    cp = _round_up(n_classes, 128)  # lane-dense padded class dim

    # Pad class dim: zero weight columns, large-negative bias so exp() of padded cols is 0.
    if cp != n_classes:
        w2p = jnp.pad(w2, ((0, 0), (0, cp - n_classes)))
        b2p = jnp.pad(b2, ((0, 0), (0, cp - n_classes)), constant_values=-1e30)
    else:
        w2p, b2p = w2, b2

    # bf16 for the HBM->VMEM transfer + MXU; biases stay f32 (added into the f32 accumulator).
    x_bf = x.astype(jnp.bfloat16)
    w1_bf = w1.astype(jnp.bfloat16)
    w2_bf = w2p.astype(jnp.bfloat16)
    b1_f = b1.astype(jnp.float32)
    b2_f = b2p.astype(jnp.float32)

    # Batch tile: large for pipeline efficiency, but never larger than the (8-aligned) batch.
    tm = min(tm, _round_up(B, 8))
    bp = _round_up(B, tm)
    if bp != B:
        x_bf = jnp.pad(x_bf, ((0, bp - B), (0, 0)))

    grid = (pl.cdiv(bp, tm),)
    out = pl.pallas_call(
        _mlp_softmax_kernel,
        out_shape=jax.ShapeDtypeStruct((bp, cp), jnp.float32),
        grid_spec=pl.GridSpec(
            grid=grid,
            in_specs=[
                pl.BlockSpec((tm, F), lambda i: (i, 0)),          # x: tiled over batch
                pl.BlockSpec((F, hidden), lambda i: (0, 0)),      # w1: VMEM-resident
                pl.BlockSpec((1, hidden), lambda i: (0, 0)),      # b1: VMEM-resident
                pl.BlockSpec((hidden, cp), lambda i: (0, 0)),     # w2: VMEM-resident
                pl.BlockSpec((1, cp), lambda i: (0, 0)),          # b2: VMEM-resident
            ],
            out_specs=pl.BlockSpec((tm, cp), lambda i: (i, 0)),   # lane-dense output tile
        ),
        compiler_params=pltpu.CompilerParams(
            dimension_semantics=("parallel",),        # shard batch tiles across TCs (v7x)
            vmem_limit_bytes=64 * 1024 * 1024,        # explicit budget, valid on v5e/v6e/v7x
        ),
    )(x_bf, w1_bf, b1_f, w2_bf, b2_f)

    return out[:B, :n_classes]


def init_params(key, num_features, hidden=32, num_classes=104):
    """Deterministic init mirroring nn.Linear's U(-1/sqrt(fan_in), 1/sqrt(fan_in)).
    Weights stored as [in, out] (transpose of PyTorch's [out, in])."""
    k1, k2, k3, k4 = jax.random.split(key, 4)
    bound1 = 1.0 / jnp.sqrt(num_features)
    bound2 = 1.0 / jnp.sqrt(hidden)
    w1 = jax.random.uniform(k1, (num_features, hidden), jnp.float32, -bound1, bound1)
    b1 = jax.random.uniform(k2, (1, hidden), jnp.float32, -bound1, bound1)
    w2 = jax.random.uniform(k3, (hidden, num_classes), jnp.float32, -bound2, bound2)
    b2 = jax.random.uniform(k4, (1, num_classes), jnp.float32, -bound2, bound2)
    return w1, b1, w2, b2


if __name__ == "__main__":
    num_features = 16
    batch = 8

    key = jax.random.PRNGKey(0)
    kx, kp = jax.random.split(key)
    x = jax.random.normal(kx, (batch, num_features), dtype=jnp.float32)
    w1, b1, w2, b2 = init_params(kp, num_features)

    out = pytorch_multiclass_forward(x, w1, b1, w2, b2)
    out = jax.block_until_ready(out)

    # sanity: shape, rows of a softmax sum to 1, and close to the pure-JAX f32 reference
    assert out.shape == (batch, 104)
    assert jnp.allclose(jnp.sum(out, axis=1), 1.0, atol=1e-5)
    ref_h = jnp.maximum(x @ w1 + b1, 0.0)
    ref = jax.nn.softmax(ref_h @ w2 + b2, axis=1)
    assert jnp.allclose(out, ref, atol=3e-2)  # bf16 input/weight tolerance

    print("KERNEL_OK")
</pallas_src>

<mosaic_0001>
module attributes {stable_mosaic.version = 11 : i64} {
  func.func @_mlp_softmax_kernel(%arg0: i32, %arg1: memref<8x16xbf16, #tpu.memory_space<vmem>>, %arg2: memref<16x32xbf16, #tpu.memory_space<vmem>>, %arg3: memref<1x32xf32, #tpu.memory_space<vmem>>, %arg4: memref<32x128xbf16, #tpu.memory_space<vmem>>, %arg5: memref<1x128xf32, #tpu.memory_space<vmem>>, %arg6: memref<8x128xf32, #tpu.memory_space<vmem>>) attributes {dimension_semantics = [#tpu.dimension_semantics<parallel>], iteration_bounds = array<i64: 1>, scalar_prefetch = 0 : i64, scratch_operands = 0 : i64, tpu.core_type = #tpu.core_type<tc>, window_params = [{transform_indices = @transform_0, window_bounds = array<i64: 8, 16>}, {pipeline_mode = #tpu.pipeline_mode<synchronous>, transform_indices = @transform_1, window_bounds = array<i64: 16, 32>}, {pipeline_mode = #tpu.pipeline_mode<synchronous>, transform_indices = @transform_2, window_bounds = array<i64: 1, 32>}, {pipeline_mode = #tpu.pipeline_mode<synchronous>, transform_indices = @transform_3, window_bounds = array<i64: 32, 128>}, {pipeline_mode = #tpu.pipeline_mode<synchronous>, transform_indices = @transform_4, window_bounds = array<i64: 1, 128>}, {transform_indices = @transform_5, window_bounds = array<i64: 8, 128>}]} {
    %c0 = arith.constant 0 : index
    %c0_0 = arith.constant 0 : index
    %0 = vector.load %arg1[%c0, %c0_0] : memref<8x16xbf16, #tpu.memory_space<vmem>>, vector<8x16xbf16>
    %c0_1 = arith.constant 0 : index
    %c0_2 = arith.constant 0 : index
    %1 = vector.load %arg2[%c0_1, %c0_2] : memref<16x32xbf16, #tpu.memory_space<vmem>>, vector<16x32xbf16>
    %cst = arith.constant dense<0.000000e+00> : vector<8x32xf32>
    %2 = tpu.matmul %0, %1, %cst {dimension_numbers = #tpu.dot_dimension_numbers<[1], [0], [0], [1], [0, 0, 1, 1], [], []>} : vector<8x16xbf16>, vector<16x32xbf16>, vector<8x32xf32> -> vector<8x32xf32>
    %c0_3 = arith.constant 0 : index
    %c0_4 = arith.constant 0 : index
    %3 = vector.load %arg3[%c0_3, %c0_4] : memref<1x32xf32, #tpu.memory_space<vmem>>, vector<1x32xf32>
    %4 = vector.broadcast %3 : vector<1x32xf32> to vector<8x32xf32>
    %5 = arith.addf %2, %4 : vector<8x32xf32>
    %cst_5 = arith.constant 0.000000e+00 : f32
    %6 = vector.broadcast %cst_5 : f32 to vector<8x32xf32>
    %7 = arith.maximumf %5, %6 : vector<8x32xf32>
    %8 = arith.truncf %7 : vector<8x32xf32> to vector<8x32xbf16>
    %c0_6 = arith.constant 0 : index
    %c0_7 = arith.constant 0 : index
    %9 = vector.load %arg4[%c0_6, %c0_7] : memref<32x128xbf16, #tpu.memory_space<vmem>>, vector<32x128xbf16>
    %cst_8 = arith.constant dense<0.000000e+00> : vector<8x128xf32>
    %10 = tpu.matmul %8, %9, %cst_8 {dimension_numbers = #tpu.dot_dimension_numbers<[1], [0], [0], [1], [0, 0, 1, 1], [], []>} : vector<8x32xbf16>, vector<32x128xbf16>, vector<8x128xf32> -> vector<8x128xf32>
    %c0_9 = arith.constant 0 : index
    %c0_10 = arith.constant 0 : index
    %11 = vector.load %arg5[%c0_9, %c0_10] : memref<1x128xf32, #tpu.memory_space<vmem>>, vector<1x128xf32>
    %12 = vector.broadcast %11 : vector<1x128xf32> to vector<8x128xf32>
    %13 = arith.addf %10, %12 : vector<8x128xf32>
    %cst_11 = arith.constant dense<0xFF800000> : vector<8xf32>
    %14 = vector.multi_reduction <maximumf>, %13, %cst_11 [1] : vector<8x128xf32> to vector<8xf32>
    %15 = vector.shape_cast %14 : vector<8xf32> to vector<8x1xf32>
    %16 = vector.broadcast %15 : vector<8x1xf32> to vector<8x128xf32>
    %17 = arith.subf %13, %16 : vector<8x128xf32>
    %18 = math.exp %17 : vector<8x128xf32>
    %cst_12 = arith.constant dense<0.000000e+00> : vector<8xf32>
    %19 = vector.multi_reduction <add>, %18, %cst_12 [1] : vector<8x128xf32> to vector<8xf32>
    %20 = vector.shape_cast %19 : vector<8xf32> to vector<8x1xf32>
    %21 = tpu.reciprocal %20 : vector<8x1xf32> -> vector<8x1xf32>
    %22 = vector.broadcast %21 : vector<8x1xf32> to vector<8x128xf32>
    %23 = arith.mulf %18, %22 : vector<8x128xf32>
    %c0_13 = arith.constant 0 : index
    %c0_14 = arith.constant 0 : index
    %24 = vector.load %arg6[%c0_13, %c0_14] : memref<8x128xf32, #tpu.memory_space<vmem>>, vector<8x128xf32>
    tpu.vector_store %arg6[%c0_13, %c0_14], %23 {strides = array<i32>} : memref<8x128xf32, #tpu.memory_space<vmem>>, vector<8x128xf32>,
    return
  }
  func.func @transform_0(%arg0: i32) -> (i32, i32) {
    %c0_i32 = arith.constant 0 : i32
    %c0_i32_0 = arith.constant 0 : i32
    return %arg0, %c0_i32 : i32, i32
  }
  func.func @transform_1(%arg0: i32) -> (i32, i32) {
    %c0_i32 = arith.constant 0 : i32
    %c0_i32_0 = arith.constant 0 : i32
    %c0_i32_1 = arith.constant 0 : i32
    return %c0_i32, %c0_i32_0 : i32, i32
  }
  func.func @transform_2(%arg0: i32) -> (i32, i32) {
    %c0_i32 = arith.constant 0 : i32
    %c0_i32_0 = arith.constant 0 : i32
    %c0_i32_1 = arith.constant 0 : i32
    return %c0_i32, %c0_i32_0 : i32, i32
  }
  func.func @transform_3(%arg0: i32) -> (i32, i32) {
    %c0_i32 = arith.constant 0 : i32
    %c0_i32_0 = arith.constant 0 : i32
    %c0_i32_1 = arith.constant 0 : i32
    return %c0_i32, %c0_i32_0 : i32, i32
  }
  func.func @transform_4(%arg0: i32) -> (i32, i32) {
    %c0_i32 = arith.constant 0 : i32
    %c0_i32_0 = arith.constant 0 : i32
    %c0_i32_1 = arith.constant 0 : i32
    return %c0_i32, %c0_i32_0 : i32, i32
  }
  func.func @transform_5(%arg0: i32) -> (i32, i32) {
    %c0_i32 = arith.constant 0 : i32
    %c0_i32_0 = arith.constant 0 : i32
    return %arg0, %c0_i32 : i32, i32
  }
}

</mosaic_0001>

<bundles_post_ra>
// kernel: tpu_custom_call.1
= control target key start
LH: loop header
LB: loop body
LE: loop exit
PB: predicated region body
PF: predicated region fallthrough
CT: control target
= control target key end

     0   :  { %10 = vsyncpa [#allocation3], 0  ;;  %s535_s0 = inlined_call_operand.hbm [shape: bf16[8,16], index: 0, kind: input, shape index: {}]   ;;  %s536_s1 = inlined_call_operand.hbm [shape: bf16[16,32], index: 1, kind: input, shape index: {}]   ;;  %s537_s2 = inlined_call_operand.hbm [shape: f32[1,32], index: 2, kind: input, shape index: {}]   ;;  %s538_s3 = inlined_call_operand.hbm [shape: bf16[32,128], index: 3, kind: input, shape index: {}]   ;;  %s539_s4 = inlined_call_operand.hbm [shape: f32[1,128], index: 4, kind: input, shape index: {}]   ;;  %s540_s5 = inlined_call_operand.hbm [shape: f32[8,128], index: 5, kind: output, shape index: {}]  }
   0x1   :  { %11 = vsyncpa [#allocation6], 0 }
   0x2   :  { %12 = vsyncpa [#allocation9], 0 }
   0x3   :  { %13 = vsyncpa [#allocation4], 0  ;;  %s423_s18 = smov [#allocation5]   ;;  %s283_s22 = scalar_lea.hbm %s536_s1, 128 }
   0x4   :  { %s29_s19 = sshll.u32 %s423_s18, 4  ;;  %p284_p0 = scmp.ne.s32.totalorder %s536_s1, %s283_s22  ;;  %s30_s19 = int_to_ptr.vmem [resolvable:$true] %s29_s19 }
   0x5   :  { %p287_p1 = scmp.lt.u32.totalorder %s283_s22, %s536_s1 }
   0x7   :  { %p289_p2 = pnand %p287_p1, %p284_p0 }
   0x9   :  { %292 = shalt.err (!%p289_p2)
}
   0xa   :  { %s293_s27 = scalar_lea.vmem %s30_s19, 128  ;;  %p298_p4 = scmp.lt.s32.totalorder %s30_s19, %s30_s19 }
   0xb   :  { %p294_p3 = scmp.ne.s32.totalorder %s30_s19, %s293_s27  ;;  %p299_p5 = scmp.lt.s32.totalorder %s293_s27, %s293_s27 }
   0xd   :  { %p300_p6 = por %p299_p5, %p298_p4 }
   0xf   :  { %p301_p7 = pnand %p300_p6, %p294_p3 }
  0x11   :  { %304 = shalt.err (!%p301_p7)
}
  0x12   :  { %s424_s28 = smov 64   ;;  %s425_s29 = smov 4  }
  0x13   :  { %35 = dma.hbm_to_vmem [thread:$0]  %s536_s1, 128, %s30_s19, [#allocation6], %s424_s28, %s424_s28, %s425_s29  }
  0x14   :  { %s426_s7 = smov [#allocation8]   ;;  %s427_s9 = smov [#allocation2]  }
  0x15   :  { %s51_s8 = sshll.u32 %s426_s7, 4  ;;  %s20_s10 = sshll.u32 %s427_s9, 4  ;;  %s52_s8 = int_to_ptr.vmem [resolvable:$true] %s51_s8  ;;  %s21_s10 = int_to_ptr.vmem [resolvable:$true] %s20_s10 }
  0x16   :  { %s305_s13 = scalar_lea.hbm %s538_s3, 256 }
  0x17   :  { %p306_p8 = scmp.ne.s32.totalorder %s538_s3, %s305_s13  ;;  %p309_p9 = scmp.lt.u32.totalorder %s305_s13, %s538_s3 }
  0x19   :  { %p311_p10 = pnand %p309_p9, %p306_p8 }
  0x1b   :  { %314 = shalt.err (!%p311_p10)
}
  0x1c   :  { %s315_s1 = scalar_lea.vmem %s52_s8, 256  ;;  %p320_p12 = scmp.lt.s32.totalorder %s52_s8, %s52_s8 }
  0x1d   :  { %p316_p11 = scmp.ne.s32.totalorder %s52_s8, %s315_s1  ;;  %p321_p13 = scmp.lt.s32.totalorder %s315_s1, %s315_s1 }
  0x1f   :  { %p322_p0 = por %p321_p13, %p320_p12 }
  0x21   :  { %p323_p1 = pnand %p322_p0, %p316_p11 }
  0x23   :  { %326 = shalt.err (!%p323_p1)
}
  0x24   :  { %57 = dma.hbm_to_vmem [thread:$0]  %s538_s3, 256, %s52_s8, [#allocation9], %s424_s28, %s424_s28, %s425_s29  }
  0x25   :  { %s327_s22 = scalar_lea.hbm %s535_s0, 64 }
  0x26   :  { %p328_p2 = scmp.ne.s32.totalorder %s535_s0, %s327_s22  ;;  %p331_p3 = scmp.lt.u32.totalorder %s327_s22, %s535_s0 }
  0x28   :  { %p333_p4 = pnand %p331_p3, %p328_p2 }
  0x2a   :  { %336 = shalt.err (!%p333_p4)
}
  0x2b   :  { %s337_s27 = scalar_lea.vmem %s21_s10, 64  ;;  %p342_p6 = scmp.lt.s32.totalorder %s21_s10, %s21_s10 }
  0x2c   :  { %p338_p5 = scmp.ne.s32.totalorder %s21_s10, %s337_s27  ;;  %p343_p7 = scmp.lt.s32.totalorder %s337_s27, %s337_s27 }
  0x2e   :  { %p344_p8 = por %p343_p7, %p342_p6 }
  0x30   :  { %p345_p9 = pnand %p344_p8, %p338_p5 }
  0x32   :  { %348 = shalt.err (!%p345_p9)
}
  0x33   :  { %23 = dma.hbm_to_vmem [thread:$0]  %s535_s0, 64, %s21_s10, [#allocation3]  }
  0x34   :  { %s428_s29 = smov [#allocation7]   ;;  %s429_s6 = smov [#allocation10]  }
  0x35   :  { %s42_s30 = sshll.u32 %s428_s29, 4  ;;  %s64_s7 = sshll.u32 %s429_s6, 4  ;;  %s43_s30 = int_to_ptr.vmem [resolvable:$true] %s42_s30  ;;  %s65_s7 = int_to_ptr.vmem [resolvable:$true] %s64_s7 }
  0x36   :  { %s349_s11 = scalar_lea.hbm %s537_s2, 16 }
  0x37   :  { %p350_p10 = scmp.ne.s32.totalorder %s537_s2, %s349_s11  ;;  %p353_p11 = scmp.lt.u32.totalorder %s349_s11, %s537_s2 }
  0x39   :  { %p355_p12 = pnand %p353_p11, %p350_p10 }
  0x3b   :  { %358 = shalt.err (!%p355_p12)
}
  0x3c   :  { %s359_s0 = scalar_lea.vmem %s43_s30, 16  ;;  %s363_s10 = scalar_lea.vmem %s43_s30, 32 }
  0x3d   :  { %p360_p13 = scmp.ne.s32.totalorder %s43_s30, %s359_s0  ;;  %p364_p0 = scmp.lt.s32.totalorder %s43_s30, %s43_s30 }
  0x3e   :  { %p365_p1 = scmp.lt.s32.totalorder %s363_s10, %s359_s0 }
  0x40   :  { %p366_p2 = por %p365_p1, %p364_p0 }
  0x42   :  { %p367_p3 = pnand %p366_p2, %p360_p13 }
  0x44   :  { %370 = shalt.err (!%p367_p3)
}
  0x45   :  { %45 = dma.hbm_to_vmem [thread:$0]  %s537_s2, 16, %s43_s30, [#allocation6]  }
  0x46   :  { %s371_s19 = scalar_lea.hbm %s539_s4, 16 }
  0x47   :  { %p372_p4 = scmp.ne.s32.totalorder %s539_s4, %s371_s19  ;;  %p375_p5 = scmp.lt.u32.totalorder %s371_s19, %s539_s4 }
  0x49   :  { %p377_p6 = pnand %p375_p5, %p372_p4 }
  0x4b   :  { %380 = shalt.err (!%p377_p6)
}
  0x4c   :  { %s381_s24 = scalar_lea.vmem %s65_s7, 16  ;;  %s385_s25 = scalar_lea.vmem %s65_s7, 32 }
  0x4d   :  { %p382_p7 = scmp.ne.s32.totalorder %s65_s7, %s381_s24  ;;  %p386_p8 = scmp.lt.s32.totalorder %s65_s7, %s65_s7 }
  0x4e   :  { %p387_p9 = scmp.lt.s32.totalorder %s385_s25, %s381_s24 }
  0x50   :  { %p388_p10 = por %p387_p9, %p386_p8 }
  0x52   :  { %p389_p11 = pnand %p388_p10, %p382_p7 }
  0x54   :  { %392 = shalt.err (!%p389_p11)
}
  0x55   :  { %67 = dma.hbm_to_vmem [thread:$0]  %s539_s4, 16, %s65_s7, [#allocation9]  }
  0x56   :  { %415 = dma.done.wait [#allocation3], 64  }
  0x57   :  { %416 = vsyncadd [#allocation3], 4294967232 }
  0x58   :  { %417 = dma.done.wait [#allocation6], 144  }
  0x59   :  { %418 = vsyncadd [#allocation6], 4294967152 }
  0x5a   :  { %419 = dma.done.wait [#allocation9], 272  }
  0x5b   :  { %420 = vsyncadd [#allocation9], 4294967024  ;;  %v430_v0 = vmov 0.0   ;;  %vm431_vm0 = vmmov 0   ;;  %v276_v1 = vld [vmem:[#allocation5] sm:$0xff]   ;;  %vm100_vm1 = vcmask 130048  }
  0x5c   :  { %252 = vmatprep.subr.bf16.mxu0 %v430_v0  ;;  %254 = vmatprep.mubr.msk.bf16.mxu0 %vm431_vm0, %v430_v0  ;;  %v84_v2 = vld [vmem:[#allocation2] sm:$0xf]  ;;  %v277_v3 = vld [vmem:[#allocation8] sm:$0xff]   ;;  %v278_v4 = vld [vmem:[#allocation8 + $0x8] sm:$0xff]   ;;  %vm169_vm2 = vcmask 261120   ;;  %s432_s4 = smov [#allocation11]  }
  0x5d   :  { %258 = vmatprep.subr.bf16.mxu1 %v430_v0  ;;  %262 = vmatprep.mubr.msk.bf16.mxu1 %vm431_vm0, %v430_v0  ;;  %v240_v5 = vld [vmem:[#allocation7] ss:$0 sm:$0xff]  ;;  %v243_v13 = vld [vmem:[#allocation10] ss:$0 sm:$0xff]  ;;  %s229_s27 = sshll.u32 %s432_s4, 4  ;;  %s230_s27 = int_to_ptr.vmem [resolvable:$true] %s229_s27 }
  0x5e   :  { %253 = vmatpush3.bf16.msra.mxu0 %v276_v1  ;;  %259 = vmatpush3.bf16.msra.mxu1 %v277_v3  ;;  %s393_s3 = scalar_lea.vmem %s230_s27, 128  ;;  %p398_p13 = scmp.lt.s32.totalorder %s230_s27, %s230_s27 }
  0x5f   :  { %260 = vmatprep.subr.bf16.mxu1 %v430_v0  ;;  %p394_p12 = scmp.ne.s32.totalorder %s230_s27, %s393_s3  ;;  %p399_p0 = scmp.lt.s32.totalorder %s393_s3, %s393_s3 }
  0x61   :  { %255 = vmatmul.mubr.msk.bf16.vlgmr.msra.gmra.mrb[0].mxu0 %vm100_vm1, %v84_v2  ;;  %p400_p1 = por %p399_p0, %p398_p13 }
  0x62   :  { %261 = vmatpush3.bf16.msra.mxu1 %v278_v4 }
  0x63   :  { %p401_p2 = pnand %p400_p1, %p394_p12 }
 0x134   :  { %v138_v6 = vpop.f32.mrb[0].mxu0 }
 0x135   :  { %v139_v7 = vadd.f32 %v240_v5, %v138_v6  ;;  %v256_v8 = vpop.f32.mrb[1].mxu0 }
 0x136   :  { %v141_v9 = vpop.f32.mrb[2].mxu0 }
 0x137   :  { %v144_v10 = vmax.f32 %v139_v7, 0.0  ;;  %v257_v11 = vpop.f32.mrb[3].mxu0 }
 0x139   :  { %v145_v12 = vpack.c.bf16 %v144_v10, %v144_v10 }
 0x13b   :  { %263 = vmatmul.mubr.msk.bf16.vlgmr.msra.gmra.mrb[0].mxu1 %vm169_vm2, %v145_v12 }
 0x20e   :  { %v207_v14 = vpop.f32.mrb[0].mxu1 }
 0x20f   :  { %v208_v15 = vadd.f32 %v243_v13, %v207_v14  ;;  %v264_v16 = vpop.f32.mrb[1].mxu1 }
 0x210   :  { %v210_v17 = vpop.f32.mrb[2].mxu1 }
 0x211   :  { %213 = vmax.xlane.f32.xlu0 %v208_v15  ;;  %v265_v18 = vpop.f32.mrb[3].mxu1 }
 0x29e   :  { %v214_v19 = vpop.xlane.xlu0 %213 }
 0x29f   :  { %v215_v20 = vsub.f32 %v208_v15, %v214_v19 }
 0x2a1   :  { %v216_v21 = vmul.f32 1.442695, %v215_v20 }
 0x2a3   :  { %279 = vpow2.f32 %v216_v21 }
 0x2ad   :  { %v280_v22 = vpop.eup %279 }
 0x2ae   :  { %218 = vadd.xlane.f32.xlu0 %v280_v22 }
 0x33b   :  { %v219_v23 = vpop.xlane.xlu0 %218 }
 0x33c   :  { %281 = vrcp.f32 %v219_v23 }
 0x346   :  { %v282_v24 = vpop.eup %281 }
 0x347   :  { %v221_v25 = vmul.f32 %v282_v24, %v280_v22 }
 0x349   :  { %222 = vst [vmem:[#allocation11] sm:$0xff] %v221_v25 }
 0x34a   :  { %404 = shalt.err (!%p401_p2)
}
 0x34b   :  { %s405_s30 = scalar_lea.hbm %s540_s5, 128 }
 0x34c   :  { %p406_p3 = scmp.ne.s32.totalorder %s540_s5, %s405_s30  ;;  %p409_p4 = scmp.lt.u32.totalorder %s405_s30, %s540_s5 }
 0x34e   :  { %p411_p5 = pnand %p409_p4, %p406_p3 }
 0x350   :  { %414 = shalt.err (!%p411_p5)
}
 0x351   :  { %232 = dma.vmem_to_hbm [thread:$0]  %s230_s27, 128, %s540_s5, [#allocation4]  }
 0x352   :  { %421 = dma.done.wait [#allocation4], 128  }
 0x353   :  { %422 = vsyncadd [#allocation4], 4294967168 }
 0x354   :  { %236 = vsyncpa [#allocation3], 1 }
 0x355   :  { %237 = vsyncpa [#allocation6], 1 }
 0x356   :  { %238 = vsyncpa [#allocation9], 1 }
 0x357   :  { %239 = vsyncpa [#allocation4], 1 }

</bundles_post_ra>
